<compile_context>
chip_gen: v5e
topology: v5e:2x2
jax: 0.10.0
libtpu: 0.0.40
codegen_flags: <defaults>
</compile_context>

<pallas_src>
import jax
import jax.numpy as jnp
from jax.experimental import pallas as pl
from jax.experimental.pallas import tpu as pltpu


def _round_up(n, m):
    return ((n + m - 1) // m) * m


def _mlp_kernel(x_ref, w1_ref, b1_ref, w2_ref, b2_ref, w3_ref, b3_ref, o_ref):
    # x tile: (TM, IN) in the streaming dtype (bf16 by default).
    x = x_ref[...].astype(jnp.float32)

    # Layer 1: (TM, IN) @ (IN, 64) on the MXU, f32 accumulation.
    h1 = jnp.dot(x, w1_ref[...], preferred_element_type=jnp.float32)
    h1 = jnp.maximum(h1 + b1_ref[...], 0.0)          # bias + ReLU in f32 (VPU)

    # Layer 2: (TM, 64) @ (64, 32).
    h2 = jnp.dot(h1, w2_ref[...], preferred_element_type=jnp.float32)
    h2 = jnp.maximum(h2 + b2_ref[...], 0.0)

    # Layer 3 (out_features == 1): VPU multiply + XLU lane-reduce instead of an
    # MXU matmul with N=1. w3 is stored as a (1, 32) row (PyTorch (out, in)).
    out = jnp.sum(h2 * w3_ref[...], axis=-1, keepdims=True) + b3_ref[...]
    o_ref[...] = out.astype(o_ref.dtype)


def _pick_batch_tile(batch, in_features, stream_itemsize,
                     tile_cap=1024, vmem_budget_bytes=8 << 20):
    """Largest batch tile whose double-buffered x stream fits the VMEM budget,
    balanced across grid steps so batch padding stays small."""
    rows_by_vmem = max(8, (vmem_budget_bytes // (2 * in_features * stream_itemsize)) // 8 * 8)
    tm_cap = max(8, min(tile_cap, rows_by_vmem))
    num_tiles = -(-batch // tm_cap)                      # ceil
    tm = _round_up(-(-batch // num_tiles), 8)            # balanced, sublane-aligned
    return tm, num_tiles


def regressor_net_pallas(x, params, *, tile_m=1024, stream_dtype=jnp.bfloat16):
    """x: (B, input_size) f32. params: dict w1,b1,w2,b2,w3,b3 (see init_params)."""
    B, in_features = x.shape
    w1, b1 = params["w1"], params["b1"]
    w2, b2 = params["w2"], params["b2"]
    w3, b3 = params["w3"], params["b3"]
    h1_dim = w1.shape[1]
    h2_dim = w2.shape[1]

    stream_itemsize = jnp.dtype(stream_dtype).itemsize
    tm, num_tiles = _pick_batch_tile(B, in_features, stream_itemsize, tile_cap=tile_m)
    b_padded = tm * num_tiles
    if b_padded != B:
        x = jnp.pad(x, ((0, b_padded - B), (0, 0)))
    x = x.astype(stream_dtype)          # halve HBM bytes of the streamed operand

    flops = 2 * b_padded * (in_features * h1_dim + h1_dim * h2_dim + h2_dim)
    bytes_accessed = (
        b_padded * in_features * stream_itemsize                    # read x
        + b_padded * 4                                              # write out
        + sum(int(p.size) * p.dtype.itemsize for p in (w1, b1, w2, b2, w3, b3))
    )

    pinned = lambda i: (0, 0)   # weights/biases: same block every grid step

    out = pl.pallas_call(
        _mlp_kernel,
        out_shape=jax.ShapeDtypeStruct((b_padded, 1), jnp.float32),
        grid=(num_tiles,),
        in_specs=[
            pl.BlockSpec((tm, in_features), lambda i: (i, 0)),    # x: streams
            pl.BlockSpec((in_features, h1_dim), pinned),          # w1: resident
            pl.BlockSpec((1, h1_dim), pinned),                    # b1
            pl.BlockSpec((h1_dim, h2_dim), pinned),               # w2
            pl.BlockSpec((1, h2_dim), pinned),                    # b2
            pl.BlockSpec((1, h2_dim), pinned),                    # w3 (row vector)
            pl.BlockSpec((1, 1), pinned),                         # b3
        ],
        out_specs=pl.BlockSpec((tm, 1), lambda i: (i, 0)),
        compiler_params=pltpu.CompilerParams(
            dimension_semantics=("parallel",),
        ),
        cost_estimate=pl.CostEstimate(
            flops=flops, transcendentals=0, bytes_accessed=bytes_accessed),
    )(x, w1, b1, w2, b2, w3, b3)

    return out[:B]


def init_params(key, input_size):
    """Deterministic synthetic init (shapes match the nn.Linear layers)."""
    k1, k2, k3, k4, k5, k6 = jax.random.split(key, 6)

    def uniform_fanin(k, shape, fan_in):
        bound = 1.0 / jnp.sqrt(jnp.float32(fan_in))
        return jax.random.uniform(k, shape, jnp.float32, -bound, bound)

    return {
        # w1/w2 stored as (in, out) so the kernel does x @ W + b
        "w1": uniform_fanin(k1, (input_size, 64), input_size),
        "b1": uniform_fanin(k2, (1, 64), input_size),
        "w2": uniform_fanin(k3, (64, 32), 64),
        "b2": uniform_fanin(k4, (1, 32), 64),
        # w3 stored as (1, 32) == PyTorch's (out=1, in=32) layout
        "w3": uniform_fanin(k5, (1, 32), 32),
        "b3": uniform_fanin(k6, (1, 1), 32),
    }


def regressor_net_ref(x, p, precision=None):
    h1 = jnp.maximum(jnp.dot(x, p["w1"], precision=precision) + p["b1"], 0.0)
    h2 = jnp.maximum(jnp.dot(h1, p["w2"], precision=precision) + p["b2"], 0.0)
    return jnp.dot(h2, p["w3"].T, precision=precision) + p["b3"]


if __name__ == "__main__":
    key = jax.random.PRNGKey(0)
    k_x, k_p = jax.random.split(key)

    batch, input_size = 8, 32
    x = jax.random.normal(k_x, (batch, input_size), jnp.float32)
    params = init_params(k_p, input_size)

    out = regressor_net_pallas(x, params)
    out = jax.block_until_ready(out)
    assert out.shape == (batch, 1)

    # Reference on the same bf16-rounded input (kernel streams x as bf16);
    # tolerance covers MXU pass-precision differences vs. the f32 reference.
    x_bf16 = x.astype(jnp.bfloat16).astype(jnp.float32)
    ref = regressor_net_ref(x_bf16, params, precision=jax.lax.Precision.HIGHEST)
    max_err = float(jnp.max(jnp.abs(out - ref)))
    assert jnp.allclose(out, ref, atol=1e-2, rtol=1e-2), f"max_err={max_err}"

    print("KERNEL_OK")
</pallas_src>

<mosaic_0001>
module attributes {stable_mosaic.version = 11 : i64} {
  func.func @_mlp_kernel(%arg0: i32, %arg1: memref<8x32xbf16, #tpu.memory_space<vmem>>, %arg2: memref<32x64xf32, #tpu.memory_space<vmem>>, %arg3: memref<1x64xf32, #tpu.memory_space<vmem>>, %arg4: memref<64x32xf32, #tpu.memory_space<vmem>>, %arg5: memref<1x32xf32, #tpu.memory_space<vmem>>, %arg6: memref<1x32xf32, #tpu.memory_space<vmem>>, %arg7: memref<1x1xf32, #tpu.memory_space<vmem>>, %arg8: memref<8x1xf32, #tpu.memory_space<vmem>>) attributes {dimension_semantics = [#tpu.dimension_semantics<parallel>], iteration_bounds = array<i64: 1>, scalar_prefetch = 0 : i64, scratch_operands = 0 : i64, tpu.core_type = #tpu.core_type<tc>, window_params = [{transform_indices = @transform_0, window_bounds = array<i64: 8, 32>}, {pipeline_mode = #tpu.pipeline_mode<synchronous>, transform_indices = @transform_1, window_bounds = array<i64: 32, 64>}, {pipeline_mode = #tpu.pipeline_mode<synchronous>, transform_indices = @transform_2, window_bounds = array<i64: 1, 64>}, {pipeline_mode = #tpu.pipeline_mode<synchronous>, transform_indices = @transform_3, window_bounds = array<i64: 64, 32>}, {pipeline_mode = #tpu.pipeline_mode<synchronous>, transform_indices = @transform_4, window_bounds = array<i64: 1, 32>}, {pipeline_mode = #tpu.pipeline_mode<synchronous>, transform_indices = @transform_5, window_bounds = array<i64: 1, 32>}, {pipeline_mode = #tpu.pipeline_mode<synchronous>, transform_indices = @transform_6, window_bounds = array<i64: 1, 1>}, {transform_indices = @transform_7, window_bounds = array<i64: 8, 1>}]} {
    %c0 = arith.constant 0 : index
    %c0_0 = arith.constant 0 : index
    %0 = vector.load %arg1[%c0, %c0_0] : memref<8x32xbf16, #tpu.memory_space<vmem>>, vector<8x32xbf16>
    %1 = arith.extf %0 : vector<8x32xbf16> to vector<8x32xf32>
    %c0_1 = arith.constant 0 : index
    %c0_2 = arith.constant 0 : index
    %2 = vector.load %arg2[%c0_1, %c0_2] : memref<32x64xf32, #tpu.memory_space<vmem>>, vector<32x64xf32>
    %cst = arith.constant dense<0.000000e+00> : vector<8x64xf32>
    %3 = tpu.matmul %1, %2, %cst {dimension_numbers = #tpu.dot_dimension_numbers<[1], [0], [0], [1], [0, 0, 1, 1], [], []>} : vector<8x32xf32>, vector<32x64xf32>, vector<8x64xf32> -> vector<8x64xf32>
    %c0_3 = arith.constant 0 : index
    %c0_4 = arith.constant 0 : index
    %4 = vector.load %arg3[%c0_3, %c0_4] : memref<1x64xf32, #tpu.memory_space<vmem>>, vector<1x64xf32>
    %5 = vector.broadcast %4 : vector<1x64xf32> to vector<8x64xf32>
    %6 = arith.addf %3, %5 : vector<8x64xf32>
    %cst_5 = arith.constant 0.000000e+00 : f32
    %7 = vector.broadcast %cst_5 : f32 to vector<8x64xf32>
    %8 = arith.maximumf %6, %7 : vector<8x64xf32>
    %c0_6 = arith.constant 0 : index
    %c0_7 = arith.constant 0 : index
    %9 = vector.load %arg4[%c0_6, %c0_7] : memref<64x32xf32, #tpu.memory_space<vmem>>, vector<64x32xf32>
    %cst_8 = arith.constant dense<0.000000e+00> : vector<8x32xf32>
    %10 = tpu.matmul %8, %9, %cst_8 {dimension_numbers = #tpu.dot_dimension_numbers<[1], [0], [0], [1], [0, 0, 1, 1], [], []>} : vector<8x64xf32>, vector<64x32xf32>, vector<8x32xf32> -> vector<8x32xf32>
    %c0_9 = arith.constant 0 : index
    %c0_10 = arith.constant 0 : index
    %11 = vector.load %arg5[%c0_9, %c0_10] : memref<1x32xf32, #tpu.memory_space<vmem>>, vector<1x32xf32>
    %12 = vector.broadcast %11 : vector<1x32xf32> to vector<8x32xf32>
    %13 = arith.addf %10, %12 : vector<8x32xf32>
    %cst_11 = arith.constant 0.000000e+00 : f32
    %14 = vector.broadcast %cst_11 : f32 to vector<8x32xf32>
    %15 = arith.maximumf %13, %14 : vector<8x32xf32>
    %c0_12 = arith.constant 0 : index
    %c0_13 = arith.constant 0 : index
    %16 = vector.load %arg6[%c0_12, %c0_13] : memref<1x32xf32, #tpu.memory_space<vmem>>, vector<1x32xf32>
    %17 = vector.broadcast %16 : vector<1x32xf32> to vector<8x32xf32>
    %18 = arith.mulf %15, %17 : vector<8x32xf32>
    %cst_14 = arith.constant dense<0.000000e+00> : vector<8xf32>
    %19 = vector.multi_reduction <add>, %18, %cst_14 [1] : vector<8x32xf32> to vector<8xf32>
    %20 = vector.shape_cast %19 : vector<8xf32> to vector<8x1xf32>
    %c0_15 = arith.constant 0 : index
    %c0_16 = arith.constant 0 : index
    %21 = vector.load %arg7[%c0_15, %c0_16] : memref<1x1xf32, #tpu.memory_space<vmem>>, vector<1x1xf32>
    %22 = vector.broadcast %21 : vector<1x1xf32> to vector<8x1xf32>
    %23 = arith.addf %20, %22 : vector<8x1xf32>
    %c0_17 = arith.constant 0 : index
    %c0_18 = arith.constant 0 : index
    %24 = vector.load %arg8[%c0_17, %c0_18] : memref<8x1xf32, #tpu.memory_space<vmem>>, vector<8x1xf32>
    tpu.vector_store %arg8[%c0_17, %c0_18], %23 {strides = array<i32>} : memref<8x1xf32, #tpu.memory_space<vmem>>, vector<8x1xf32>,
    return
  }
  func.func @transform_0(%arg0: i32) -> (i32, i32) {
    %c0_i32 = arith.constant 0 : i32
    %c0_i32_0 = arith.constant 0 : i32
    return %arg0, %c0_i32 : i32, i32
  }
  func.func @transform_1(%arg0: i32) -> (i32, i32) {
    %c0_i32 = arith.constant 0 : i32
    %c0_i32_0 = arith.constant 0 : i32
    %c0_i32_1 = arith.constant 0 : i32
    return %c0_i32, %c0_i32_0 : i32, i32
  }
  func.func @transform_2(%arg0: i32) -> (i32, i32) {
    %c0_i32 = arith.constant 0 : i32
    %c0_i32_0 = arith.constant 0 : i32
    %c0_i32_1 = arith.constant 0 : i32
    return %c0_i32, %c0_i32_0 : i32, i32
  }
  func.func @transform_3(%arg0: i32) -> (i32, i32) {
    %c0_i32 = arith.constant 0 : i32
    %c0_i32_0 = arith.constant 0 : i32
    %c0_i32_1 = arith.constant 0 : i32
    return %c0_i32, %c0_i32_0 : i32, i32
  }
  func.func @transform_4(%arg0: i32) -> (i32, i32) {
    %c0_i32 = arith.constant 0 : i32
    %c0_i32_0 = arith.constant 0 : i32
    %c0_i32_1 = arith.constant 0 : i32
    return %c0_i32, %c0_i32_0 : i32, i32
  }
  func.func @transform_5(%arg0: i32) -> (i32, i32) {
    %c0_i32 = arith.constant 0 : i32
    %c0_i32_0 = arith.constant 0 : i32
    %c0_i32_1 = arith.constant 0 : i32
    return %c0_i32, %c0_i32_0 : i32, i32
  }
  func.func @transform_6(%arg0: i32) -> (i32, i32) {
    %c0_i32 = arith.constant 0 : i32
    %c0_i32_0 = arith.constant 0 : i32
    %c0_i32_1 = arith.constant 0 : i32
    return %c0_i32, %c0_i32_0 : i32, i32
  }
  func.func @transform_7(%arg0: i32) -> (i32, i32) {
    %c0_i32 = arith.constant 0 : i32
    %c0_i32_0 = arith.constant 0 : i32
    return %arg0, %c0_i32 : i32, i32
  }
}

</mosaic_0001>

<bundles_post_ra>
// kernel: tpu_custom_call.1
= control target key start
LH: loop header
LB: loop body
LE: loop exit
PB: predicated region body
PF: predicated region fallthrough
CT: control target
= control target key end

     0   :  { %vm38_vm0 = vcmask 261120   ;;  %vm75_vm1 = vcmask 523264   ;;  %vm113_vm2 = vcmask 7168   ;;  %s221_s1 = inlined_call_operand.vmem [shape: f32[32,64], index: 1, kind: input, shape index: {}]   ;;  %s222_s0 = inlined_call_operand.vmem [shape: bf16[8,32], index: 0, kind: input, shape index: {}]   ;;  %s223_s3 = inlined_call_operand.vmem [shape: f32[64,32], index: 3, kind: input, shape index: {}]   ;;  %s224_s2 = inlined_call_operand.vmem [shape: f32[1,64], index: 2, kind: input, shape index: {}]   ;;  %s225_s4 = inlined_call_operand.vmem [shape: f32[1,32], index: 4, kind: input, shape index: {}]   ;;  %s226_s5 = inlined_call_operand.vmem [shape: f32[1,32], index: 5, kind: input, shape index: {}]   ;;  %s227_s6 = inlined_call_operand.<no memory space> [shape: f32[1,1], index: 6, kind: input, shape index: {}]   ;;  %s228_s7 = inlined_call_operand.vmem [shape: f32[8,1], index: 7, kind: output, shape index: {}]  }
   0x1   :  { %v33_v0 = vld [vmem:[%s221_s1 + $0x18] sm:$0xff]  ;;  %v32_v1 = vld [vmem:[%s221_s1 + $0x10] sm:$0xff]  ;;  %v28_v2 = vld [vmem:[%s222_s0] sm:$0xf]  ;;  %v12_v18 = vstv %s227_s6 }
   0x2   :  { %54 = vmatpush.msra.mxu0 %v33_v0  ;;  %v70_v3 = vld [vmem:[%s223_s3 + $0x38] sm:$0xff]  ;;  %v31_v4 = vld [vmem:[%s221_s1 + $0x8] sm:$0xff]  ;;  %v69_v5 = vld [vmem:[%s223_s3 + $0x30] sm:$0xff]  ;;  %v29_v8 = vunpack.c.l.bf16 %v28_v2  ;;  %13 = vst [vmem:[#allocation2] sm:$0x1] %v12_v18 }
   0x3   :  { %87 = vmatpush.msra.mxu1 %v70_v3  ;;  %v68_v6 = vld [vmem:[%s223_s3 + $0x28] sm:$0xff]  ;;  %v30_v7 = vld [vmem:[%s221_s1] sm:$0xff]  ;;  %v66_v10 = vld [vmem:[%s223_s3 + $0x18] sm:$0xff] }
   0x4   :  { %55 = vmatpush.msra.mxu0 %v32_v1  ;;  %v67_v9 = vld [vmem:[%s223_s3 + $0x20] sm:$0xff]  ;;  %v65_v11 = vld [vmem:[%s223_s3 + $0x10] sm:$0xff]  ;;  %v64_v12 = vld [vmem:[%s223_s3 + $0x8] sm:$0xff] }
   0x5   :  { %88 = vmatpush.msra.mxu1 %v69_v5  ;;  %v63_v13 = vld [vmem:[%s223_s3] sm:$0xff] }
   0x6   :  { %56 = vmatpush.msra.mxu0 %v31_v4  ;;  %v121_v14 = vld [vmem:[%s224_s2] ss:$0 sm:$0xff] }
   0x7   :  { %89 = vmatpush.msra.mxu1 %v68_v6  ;;  %v122_v19 = vld [vmem:[%s225_s4] ss:$0 sm:$0xff] }
   0x8   :  { %57 = vmatpush.msra.mxu0 %v30_v7  ;;  %v123_v22 = vld [vmem:[%s226_s5] ss:$0 sm:$0xff] }
   0x9   :  { %119 = vmatmul.msk.f32.vlgmr.msra.gmra.mxu0 %vm38_vm0, %v29_v8  ;;  %90 = vmatpush.msra.mxu1 %v67_v9  ;;  %v124_v26 = vld [vmem:[#allocation2] ss:$0 sm:$0xff] }
   0xb   :  { %91 = vmatpush.msra.mxu1 %v66_v10 }
   0xd   :  { %92 = vmatpush.msra.mxu1 %v65_v11 }
   0xf   :  { %93 = vmatpush.msra.mxu1 %v64_v12 }
  0x11   :  { %94 = vmatpush.msra.mxu1 %v63_v13 }
  0x86   :  { %v59_v15 = vpop.f32.mrf.mxu0 }
  0x87   :  { %v60_v16 = vadd.f32 %v121_v14, %v59_v15 }
  0x89   :  { %v62_v17 = vmax.f32 %v60_v16, 0.0 }
  0x8b   :  { %120 = vmatmul.msk.f32.vlgmr.msra.gmra.mxu1 %vm75_vm1, %v62_v17 }
 0x108   :  { %v96_v20 = vpop.f32.mrf.mxu1 }
 0x109   :  { %v97_v21 = vadd.f32 %v122_v19, %v96_v20 }
 0x10b   :  { %v99_v23 = vmax.f32 %v97_v21, 0.0 }
 0x10d   :  { %v104_v24 = vmul.f32 %v123_v22, %v99_v23 }
 0x10f   :  { %v105_v25 = vsel %vm38_vm0, %v104_v24, 0.0 }
 0x110   :  { %106 = vadd.xlane.f32.xlu0 %v105_v25 }
 0x183   :  { %v107_v27 = vpop.xlane.xlu0 %106 }
 0x184   :  { %v112_v28 = vadd.f32 %v124_v26, %v107_v27 }
 0x186   :  { %114 = vst.msk [vmem:[%s228_s7] sm:$0xff] %vm113_vm2, %v112_v28 }

</bundles_post_ra>
